<compile_context>
chip_gen: v5e
topology: v5e:2x2
jax: 0.10.0
libtpu: 0.0.40
codegen_flags: <defaults>
</compile_context>

<pallas_src>
import math
import functools

import jax
import jax.numpy as jnp
from jax.experimental import pallas as pl
from jax.experimental.pallas import tpu as pltpu


def make_positional_encoding_table(max_len, d_model, dtype=jnp.float32):
    """Deterministic pe buffer, identical math to the PyTorch __init__."""
    position = jnp.arange(max_len, dtype=jnp.float32)[:, None]                 # (max_len, 1)
    div_term = jnp.exp(
        jnp.arange(0, d_model, 2, dtype=jnp.float32) * (-math.log(10000.0) / d_model)
    )                                                                          # (d_model//2,)
    pe = jnp.zeros((max_len, d_model), jnp.float32)
    pe = pe.at[:, 0::2].set(jnp.sin(position * div_term))
    pe = pe.at[:, 1::2].set(jnp.cos(position * div_term))
    return pe[None, :, :].astype(dtype)                                        # (1, max_len, d_model)


# splitmix32 constants, pre-wrapped to int32 (all math below is int32 with
# wraparound; logical shifts are emulated with shift+mask so results are
# bit-identical to the uint32 reference hash).
_C1 = -1640531527   # 0x9E3779B9
_C2 = -2048144789   # 0x85EBCA6B
_C3 = -1028477387   # 0xC2B2AE35


def _pe_kernel(seed_ref, x_ref, pe_ref, o_ref, *, dropout_p, training, n_flat):
    # x_ref/pe_ref/o_ref blocks are (1, TR, C); pe is already x.dtype.
    y = x_ref[...] + pe_ref[...]

    if training and dropout_p > 0.0:
        if dropout_p >= 1.0:
            y = jnp.zeros_like(y)
        else:
            blk = x_ref.shape                       # (1, TR, C), static
            tr, c = blk[1], blk[2]
            i = pl.program_id(0)                    # row-tile index
            b = pl.program_id(1)                    # batch index
            row = jax.lax.broadcasted_iota(jnp.int32, blk, 1)
            lane = jax.lax.broadcasted_iota(jnp.int32, blk, 2)
            # Unique flat index of every element: never repeats across tiles
            # or batch elements, independent of the grid shape.
            flat = b * n_flat + (i * tr + row) * c + lane
            # Stateless splitmix32-style hash -> uniform 31-bit stream.
            # (We avoid pltpu.prng_seed/prng_random_bits: not supported in
            # interpret mode; this hash runs on the VPU which has plenty of
            # slack in a bandwidth-bound kernel.)
            h = flat + seed_ref[0] * _C1
            h = (h ^ ((h >> 16) & 0xFFFF)) * _C2
            h = (h ^ ((h >> 13) & 0x7FFFF)) * _C3
            h = h ^ ((h >> 16) & 0xFFFF)
            bits31 = h & 0x7FFFFFFF                 # uniform in [0, 2^31)
            thresh = min(int(dropout_p * float(1 << 31)), (1 << 31) - 1)
            keep = bits31 >= jnp.int32(thresh)      # P(keep) ~= 1 - p
            # Inverted dropout (nn.Dropout train-mode semantics).  RNG stream
            # intentionally differs from torch's; only the distribution matches.
            y = jnp.where(keep, y * (1.0 / (1.0 - dropout_p)), jnp.zeros_like(y))

    o_ref[...] = y


def positional_encoding(x, pe, *, dropout_p=0.1, training=False, seed=0):
    """x: (B, S, D), pe: (1, max_len, D) with max_len >= S."""
    B, S, D = x.shape
    assert pe.shape[1] >= S and pe.shape[2] == D
    N = S * D

    # (3) pre-cast pe once in the wrapper.
    pe_s = pe[:, :S, :].astype(x.dtype)

    # (4) lane-dense view of the per-batch slab: (S, D) -> (rows, C) with C a
    # multiple of 128 whenever S*D allows it (unmasked vst, trivial (8,128)
    # tiling).  Fallback keeps (S, D) so the kernel is still correct.
    C = D
    for cand in (1024, 512, 256, 128):
        if N % cand == 0:
            C = cand
            break
    rows = N // C
    x3 = x.reshape(B, rows, C)
    pe3 = pe_s.reshape(1, rows, C)

    # (1) tile rows so one block is ~2 MiB: 3 operands x 2 pipeline buffers
    # stays under the default scoped-VMEM limit on v5e (16 MiB) and v6e/v7x.
    itemsize = x.dtype.itemsize
    target_rows = max(8, (2 * 1024 * 1024) // (C * itemsize))
    if rows <= target_rows:
        tr = rows                        # full axis -> always a legal block
    else:
        tr = (target_rows // 8) * 8      # multiple of 8 -> legal block shape
    num_row_tiles = pl.cdiv(rows, tr)

    kernel = functools.partial(_pe_kernel, dropout_p=float(dropout_p),
                               training=bool(training), n_flat=N)
    seed_arr = jnp.array([seed], dtype=jnp.int32)

    out = pl.pallas_call(
        kernel,
        out_shape=jax.ShapeDtypeStruct((B, rows, C), x.dtype),
        grid_spec=pltpu.PrefetchScalarGridSpec(
            num_scalar_prefetch=1,            # dropout seed lives in SMEM
            # (2) batch is the inner (fastest) grid axis: the pe block index
            # repeats between consecutive steps, so its DMA is skipped and pe
            # is fetched once per row-tile instead of once per (row-tile, b).
            grid=(num_row_tiles, B),
            in_specs=[
                pl.BlockSpec((1, tr, C), lambda i, b, seed: (b, i, 0)),   # x
                pl.BlockSpec((1, tr, C), lambda i, b, seed: (0, i, 0)),   # pe (shared)
            ],
            out_specs=pl.BlockSpec((1, tr, C), lambda i, b, seed: (b, i, 0)),
        ),
        # (7) same-shape elementwise update: alias x (input index 1, after the
        # prefetched seed) to the output to avoid a second HBM buffer.
        input_output_aliases={1: 0},
        compiler_params=pltpu.CompilerParams(
            # (5) both axes are data-parallel -> megacore sharding on v7x.
            dimension_semantics=("parallel", "parallel"),
        ),
    )(seed_arr, x3, pe3)

    return out.reshape(B, S, D)


if __name__ == "__main__":
    B, S, D = 2, 8, 32
    MAX_LEN = 64          # module default is 5000; a small table is enough for S=8
    P = 0.1

    key = jax.random.PRNGKey(0)
    x = jax.random.normal(key, (B, S, D), dtype=jnp.float32)
    pe = make_positional_encoding_table(MAX_LEN, D, dtype=jnp.float32)

    # Eval mode (dropout is identity) — exact check vs. pure-JAX reference.
    out_eval = jax.block_until_ready(
        positional_encoding(x, pe, dropout_p=P, training=False))
    ref = x + pe[:, :S, :].astype(x.dtype)
    assert out_eval.shape == (B, S, D) and out_eval.dtype == x.dtype
    assert jnp.allclose(out_eval, ref, atol=1e-6), "eval-mode mismatch"

    # Train mode — every output must be 0 (dropped) or (x+pe)/(1-p) (kept).
    out_train = jax.block_until_ready(
        positional_encoding(x, pe, dropout_p=P, training=True, seed=123))
    scaled = ref * (1.0 / (1.0 - P))
    ok = jnp.logical_or(jnp.isclose(out_train, 0.0, atol=1e-6),
                        jnp.isclose(out_train, scaled, atol=1e-5))
    assert bool(jnp.all(ok)), "train-mode values must be 0 or scaled(x+pe)"

    print("KERNEL_OK")
</pallas_src>

<mosaic_0001>
module attributes {stable_mosaic.version = 11 : i64} {
  func.func @_pe_kernel(%arg0: i32, %arg1: i32, %arg2: memref<1xi32, #tpu.memory_space<smem>>, %arg3: memref<1x1x256xf32, #tpu.memory_space<vmem>>, %arg4: memref<1x1x256xf32, #tpu.memory_space<vmem>>, %arg5: memref<1x1x256xf32, #tpu.memory_space<vmem>>) attributes {dimension_semantics = [#tpu.dimension_semantics<parallel>, #tpu.dimension_semantics<parallel>], iteration_bounds = array<i64: 1, 2>, scalar_prefetch = 1 : i64, scratch_operands = 0 : i64, tpu.core_type = #tpu.core_type<tc>, window_params = [{transform_indices = @transform_0, window_bounds = array<i64: 1, 1, 256>}, {transform_indices = @transform_1, window_bounds = array<i64: 1, 1, 256>}, {transform_indices = @transform_2, window_bounds = array<i64: 1, 1, 256>}]} {
    %c0 = arith.constant 0 : index
    %c0_0 = arith.constant 0 : index
    %c0_1 = arith.constant 0 : index
    %0 = vector.load %arg3[%c0, %c0_0, %c0_1] : memref<1x1x256xf32, #tpu.memory_space<vmem>>, vector<1x1x256xf32>
    %c0_2 = arith.constant 0 : index
    %c0_3 = arith.constant 0 : index
    %c0_4 = arith.constant 0 : index
    %1 = vector.load %arg4[%c0_2, %c0_3, %c0_4] : memref<1x1x256xf32, #tpu.memory_space<vmem>>, vector<1x1x256xf32>
    %2 = arith.addf %0, %1 : vector<1x1x256xf32>
    %c0_5 = arith.constant 0 : index
    %c0_6 = arith.constant 0 : index
    %c0_7 = arith.constant 0 : index
    %3 = vector.load %arg5[%c0_5, %c0_6, %c0_7] : memref<1x1x256xf32, #tpu.memory_space<vmem>>, vector<1x1x256xf32>
    tpu.vector_store %arg5[%c0_5, %c0_6, %c0_7], %2 {strides = array<i32>} : memref<1x1x256xf32, #tpu.memory_space<vmem>>, vector<1x1x256xf32>,
    return
  }
  func.func @transform_0(%arg0: i32, %arg1: i32, %arg2: memref<1xi32, #tpu.memory_space<smem>>) -> (i32, i32, i32) {
    %c0_i32 = arith.constant 0 : i32
    %c0_i32_0 = arith.constant 0 : i32
    return %arg1, %arg0, %c0_i32 : i32, i32, i32
  }
  func.func @transform_1(%arg0: i32, %arg1: i32, %arg2: memref<1xi32, #tpu.memory_space<smem>>) -> (i32, i32, i32) {
    %c0_i32 = arith.constant 0 : i32
    %c0_i32_0 = arith.constant 0 : i32
    %c0_i32_1 = arith.constant 0 : i32
    return %c0_i32, %arg0, %c0_i32_0 : i32, i32, i32
  }
  func.func @transform_2(%arg0: i32, %arg1: i32, %arg2: memref<1xi32, #tpu.memory_space<smem>>) -> (i32, i32, i32) {
    %c0_i32 = arith.constant 0 : i32
    %c0_i32_0 = arith.constant 0 : i32
    return %arg1, %arg0, %c0_i32 : i32, i32, i32
  }
}

</mosaic_0001>

<bundles_post_ra>
// kernel: tpu_custom_call.1
= control target key start
LH: loop header
LB: loop body
LE: loop exit
PB: predicated region body
PF: predicated region fallthrough
CT: control target
= control target key end

     0   :  { %9 = vsyncpa [#allocation5], 0  ;;  %s654_s0 = inlined_call_operand.<no memory space> [shape: s32[1], index: 0, kind: input, shape index: {}]   ;;  %s655_s1 = inlined_call_operand.hbm [shape: f32[2,1,256], index: 1, kind: input, shape index: {}, may-alias: {1,3}]   ;;  %s656_s2 = inlined_call_operand.vmem [shape: f32[1,1,256], index: 2, kind: input, shape index: {}]   ;;  %s657_s3 = inlined_call_operand.hbm [shape: f32[2,1,256], index: 3, kind: output, shape index: {}, may-alias: {1,3}]  }
   0x1   :  { %11 = vsyncpa [#allocation5 + $0x1], 0 }
   0x2   :  { %12 = vsyncpa [#allocation6], 0 }
   0x3   :  { %14 = vsyncpa [#allocation6 + $0x1], 0  ;;  %s531_s12 = smov 0   ;;  %s533_s13 = smov 0  }
   0x4   :  { %s535_s14 = smov 0   ;;  %s537_s0 = smov 0  }
   0x5   :  { %s539_s15 = smov 0   ;;  %s541_s16 = smov 0  }
   0x6 LB: > { %s321_s17 = sadd.s32 4294967295, %s509_s16   ;;  %s322_s18 = sadd.s32 4294967294, %s509_s16   ;;  %s509_s16 = sphi %s541_s16, %s20_s16   ;;  %s505_s15 = sphi %s539_s15, %s666_s15   ;;  %s501_s0 = sphi %s537_s0, %s665_s0   ;;  %s497_s14 = sphi %s535_s14, %s664_s14   ;;  %s493_s13 = sphi %s533_s13, %s663_s13   ;;  %s489_s12 = sphi %s531_s12, %s662_s12  }
   0x7   : > { %s29_s19 = sadd.s32 1, %s505_s15  ;;  %s41_s20 = sadd.s32 1, %s497_s14 }
   0x8   : > { %p30_p0 = scmp.ge.s32.totalorder %s29_s19, 2  ;;  %p48_p1 = scmp.ne.s32.totalorder %s497_s14, %s493_s13 }
   0x9   : > { %p49_p2 = scmp.eq.s32.totalorder %s509_s16, 0  ;;  %p54_p3 = scmp.ne.s32.totalorder %s493_s13, %s489_s12 }
   0xa   : > { %s668_s19 = smov (%p30_p0, %s29_s19), 0  ;;  %p55_p5 = scmp.eq.s32.totalorder %s321_s17, 0 }
   0xb   : > { %p572_p4 = por %p49_p2, %p48_p1  ;;  %s36_s22 = ssub.s32 %s505_s15, %s668_s19 }
   0xc   : > { %p106_p6 = scmp.eq.s32.totalorder %s321_s17, 1  ;;  %p39_p7 = scmp.eq.s32.totalorder %s36_s22, 0 }
   0xd   : > { %p578_p8 = por %p55_p5, %p54_p3  ;;  %p112_p10 = scmp.eq.s32.totalorder %s322_s18, 1 }
   0xe   : > { %p582_p9 = por %p106_p6, %p48_p1  ;;  %p325_p12 = scmp.ge.s32.totalorder %s509_s16, 2 }
   0xf   : > { %s587_s25 = scalar_select %p39_p7, %s497_s14, %s41_s20  }
  0x10   : > { %p589_p11 = por %p112_p10, %p54_p3  ;;  %p347_p13 = scmp.lt.s32.totalorder %s509_s16, 2 }
  0x11   : > { %s139_s27 = sand.u32 1, %s497_s14   ;;  %s327_s29 = sshll.u32 %s505_s15, 1 }
  0x12   : > { %s326_s28 = sshll.u32 %s139_s27, 1  ;;  %s149_s5 = scalar_lea.hbm %s655_s1, %s327_s29 }
  0x13   : > { %s143_s6 = scalar_lea.vmem [#allocation4], %s326_s28  ;;  %s151_s8 = sshll.u32 %s149_s5, 4  ;;  %s152_s8 = int_to_ptr.hbm [resolvable:$true] %s151_s8 }
  0x14   : > { %s153_s7 = sshll.u32 %s143_s6, 4  ;;  %p340_p0 = pnand %p347_p13, %p572_p4  ;;  %s154_s7 = int_to_ptr.vmem [resolvable:$true] %s153_s7 }
  0x15   : > { %p328_p1 = scmp.ge.s32.totalorder %s509_s16, 1  ;;  %p158_p2 = scmp.lt.s32.totalorder %s509_s16, 3 }
  0x16   : > { %s140_s9 = scalar_lea.sflag [#allocation5], %s139_s27 }
  0x17   : > { %342 = dma.hbm_to_vmem [thread:$0]  (!%p340_p0), %s152_s8, 32, %s154_s7, %s140_s9  }
  0x18   : > { %p159_p3 = pnand %p328_p1, %p158_p2 }
  0x19   : > { %s605_s10 = sand.u32 (!%p159_p3), 1, %s493_s13  }
  0x1a   : > { %162 = sbr.rel (%p159_p3) target bundleno = 47 (0x2f), region = 28  ;;  %s329_s11 = sshll.u32 (!%p159_p3), %s605_s10, 1 }
  0x1b   : > { %s165_s17 = scalar_lea.sflag (!%p159_p3), [#allocation5], %s605_s10  ;;  %s168_s18 = scalar_lea.vmem (!%p159_p3), [#allocation4], %s329_s11 }
  0x1f   : > { %480 = dma.done.wait (%p578_p8), %s165_s17, 32  }
  0x20   : > { %482 = vsyncadd (%p578_p8), %s165_s17, 4294967264  ;;  %s332_s20 = sshll.u32 %s501_s0, 1  ;;  %v201_v0 = vlaneseq  ;;  %s193_s28 = scalar_lea.vmem [#allocation7], %s329_s11  ;;  %v198_v1 = vld [vmem:[%s168_s18] sm:$0x3] }
  0x21   : > { %s219_s27 = scalar_lea.hbm %s657_s3, %s332_s20  ;;  %s221_s29 = sshll.u32 %s193_s28, 4  ;;  %v199_v2 = vld [vmem:[%s656_s2] sm:$0x3]  ;;  %s222_s29 = int_to_ptr.vmem [resolvable:$true] %s221_s29 }
  0x22   : > { %s223_s30 = sshll.u32 %s219_s27, 4  ;;  %vm203_vm0 = vcmp.lt.s32.totalorder %v201_v0, 256  ;;  %v200_v3 = vadd.f32 %v199_v2, %v198_v1  ;;  %s207_s0 = scalar_lea.sflag [#allocation6], %s605_s10  ;;  %s224_s30 = int_to_ptr.hbm [resolvable:$true] %s223_s30 }
  0x23   : > { %s441_s23 = sshra.s32 %s224_s30, 4  ;;  %s447_s9 = scalar_lea.hbm %s657_s3, 4  ;;  %s442_s23 = int_to_ptr.hbm [resolvable:$true] %s441_s23 }
  0x24   : > { %205 = vst.msk [vmem:[%s193_s28] sm:$0x3] %vm203_vm0, %v200_v3  ;;  %s443_s6 = scalar_lea.hbm %s442_s23, 2  ;;  %p448_p7 = scmp.lt.s32.totalorder %s442_s23, %s657_s3 }
  0x25   : > { %p444_p4 = scmp.ne.s32.totalorder %s442_s23, %s443_s6  ;;  %p449_p8 = scmp.lt.s32.totalorder %s447_s9, %s443_s6 }
  0x27   : > { %p445_p5 = pnand %p444_p4, %p582_p9  ;;  %p450_p10 = por %p449_p8, %p448_p7 }
  0x29   : > { %p446_p6 = pneg %p445_p5 }
  0x2b   : > { %p451_p13 = pnand %p450_p10, %p446_p6 }
  0x2d   : > { %454 = shalt.err (!%p451_p13)
}
  0x2e   : > { %337 = dma.vmem_to_hbm [thread:$0]  (%p582_p9), %s222_s29, 32, %s224_s30, %s207_s0  }
  0x2f PF: > { %s235_s10 = sand.u32 1, %s489_s12   ;;  %p344_p0 = pnand %p325_p12, %p589_p11 }
  0x30   : > { %s236_s18 = scalar_lea.sflag [#allocation6], %s235_s10 }
  0x31   : > { %p345_p1 = pneg %p344_p0 }
  0x33   : > { %484 = dma.done.wait (%p345_p1), %s236_s18, 32  }
  0x34   : > { %486 = vsyncadd (%p345_p1), %s236_s18, 4294967264  ;;  %s20_s16 = sadd.s32 1, %s509_s16   ;;  %s662_s12 = smov %s493_s13 }
  0x35   : > { %p17_p2 = scmp.ge.s32.totalorder %s20_s16, 4   ;;  %s663_s13 = smov %s497_s14 }
  0x36   : > { %s664_s14 = smov %s587_s25  ;;  %s665_s0 = smov %s505_s15 }
  0x37   : > { %s666_s15 = smov %s668_s19  ;;  %19 = sbr.rel (!%p17_p2) target bundleno = 6 (0x6), region = 76 }
  0x3c   :  { %242 = vsyncpa [#allocation5], 1 }
  0x3d   :  { %244 = vsyncpa [#allocation5 + $0x1], 1 }
  0x3e   :  { %245 = vsyncpa [#allocation6], 1 }
  0x3f   :  { %247 = vsyncpa [#allocation6 + $0x1], 1 }

</bundles_post_ra>
